<compile_context>
chip_gen: v7x
topology: tpu7x:2x2x1
jax: 0.10.0
libtpu: 0.0.40
codegen_flags: <defaults>
</compile_context>

<pallas_src>
import functools

import jax
import jax.numpy as jnp
from jax import lax
from jax.experimental import pallas as pl
from jax.experimental.pallas import tpu as pltpu


def _round_up(n, m):
    return ((n + m - 1) // m) * m


def _pack_offsets(d_pad, hidden):
    """Row offsets of each parameter inside the packed (rows, 4H) buffer."""
    o_wih = 0
    o_whh = o_wih + _round_up(d_pad, 8)
    o_b = o_whh + _round_up(hidden, 8)
    o_w1 = o_b + 8
    o_b1 = o_w1 + _round_up(hidden, 8)
    o_w2 = o_b1 + 1
    o_b2 = o_w2 + 1
    rows = _round_up(o_b2 + 1, 8)
    return (o_wih, o_whh, o_b, o_w1, o_b1, o_w2, o_b2), rows


def lstm_regressor_kernel(x_ref, pk_ref, out_ref, *, seq_len, batch_pad,
                          hidden, offs):
    """Whole forward pass in one kernel invocation (grid=()).

    x_ref:   (T*Bp, Dp) time-major, batch-flattened, zero-padded input
    pk_ref:  (rows, 4H) packed parameters (wih | whh | bias | w1 | b1 | w2 | b2)
    out_ref: (Bp, 1)
    """
    T, Bp, H = seq_len, batch_pad, hidden
    G = 4 * H
    Dp = x_ref.shape[1]
    o_wih, o_whh, o_b, o_w1, o_b1, o_w2, o_b2 = offs

    # Static, aligned slices of the single packed parameter buffer.
    wih = pk_ref[o_wih:o_wih + Dp, :]            # (Dp, 4H), pad rows are zero
    whh = pk_ref[o_whh:o_whh + H, :]             # (H, 4H)
    b = pk_ref[o_b:o_b + 1, :]                   # (1, 4H) = b_ih + b_hh
    w1 = pk_ref[o_w1:o_w1 + H, :]                # (H, 128), lanes >= dense zero
    b1 = pk_ref[o_b1:o_b1 + 1, :]                # (1, 128), lanes >= dense zero
    w2r = pk_ref[o_w2:o_w2 + 1, :]               # (1, 128) = w2.T padded
    b2_row = pk_ref[o_b2:o_b2 + 1, :]            # (1, 128), b2 in lane 0

    # (4) Input projection for all timesteps as ONE f32 MXU matmul (+ bias),
    #     kept as a value (no VMEM scratch round-trip).
    xg = jnp.dot(x_ref[...], wih,
                 preferred_element_type=jnp.float32) + b        # (T*Bp, 4H)

    # (7) Loop-invariant hoists.
    whh_bf = whh.astype(jnp.bfloat16)
    lane = lax.broadcasted_iota(jnp.int32, (Bp, G), 1)
    is_g = (lane >= 2 * H) & (lane < 3 * H)                     # tanh lanes

    h = jnp.zeros((Bp, H), jnp.float32)
    c = jnp.zeros((Bp, H), jnp.float32)
    for t in range(T):                                          # fully unrolled
        # (2) Only the bf16 recurrent matmul sits on the serial chain.
        gates = xg[t * Bp:(t + 1) * Bp, :] + jnp.dot(
            h.astype(jnp.bfloat16), whh_bf,
            preferred_element_type=jnp.float32)                 # (Bp, 4H)
        # (1) One EUP push for all gates: sigmoid(x) = 0.5*tanh(x/2) + 0.5.
        th = jnp.tanh(jnp.where(is_g, gates, 0.5 * gates))
        act = jnp.where(is_g, th, 0.5 * th + 0.5)
        i_g = act[:, 0 * H:1 * H]
        f_g = act[:, 1 * H:2 * H]
        g_g = act[:, 2 * H:3 * H]
        o_g = act[:, 3 * H:4 * H]
        c = f_g * c + i_g * g_g
        h = o_g * jnp.tanh(c)

    # Head (f32, off the critical path): ReLU(fc1(h_T)) -> fc2.
    # w1/b1 lanes >= dense are zero, so d1 is exactly zero there and the
    # fc2 lane-reduction against the zero-padded w2 row is exact.
    d1 = jnp.maximum(
        jnp.dot(h, w1, preferred_element_type=jnp.float32) + b1, 0.0)
    fc2 = jnp.sum(d1 * w2r, axis=-1, keepdims=True)             # (Bp, 1)
    out_ref[...] = fc2 + b2_row[:, 0:1]


def lstm_regressor_forward(x_btd, params):
    """x_btd: (B, T, D) float32 (PyTorch batch_first layout). Returns (B, 1)."""
    B, T, D = x_btd.shape
    H = params["whh"].shape[0]
    DN = params["w1"].shape[1]
    G = 4 * H

    Bp = _round_up(max(B, 8), 8)     # (3) batch padded to a full sublane tile
    Dp = _round_up(max(D, 8), 8)     #     features padded to 8 lanes

    offs, rows = _pack_offsets(Dp, H)
    o_wih, o_whh, o_b, o_w1, o_b1, o_w2, o_b2 = offs

    # (5) Pack all parameters into one contiguous (rows, 4H) f32 buffer.
    pk = jnp.zeros((rows, G), jnp.float32)
    pk = pk.at[o_wih:o_wih + D, :].set(params["wih"])
    pk = pk.at[o_whh:o_whh + H, :].set(params["whh"])
    pk = pk.at[o_b, :].set(params["b"][0])
    pk = pk.at[o_w1:o_w1 + H, :DN].set(params["w1"])
    pk = pk.at[o_b1, :DN].set(params["b1"][0])
    pk = pk.at[o_w2, :DN].set(params["w2"][:, 0])
    pk = pk.at[o_b2, 0].set(params["b2"][0, 0])

    # Time-major, zero-padded, batch-flattened input: row t*Bp + b.
    x_tm = jnp.zeros((T, Bp, Dp), jnp.float32)
    x_tm = x_tm.at[:, :B, :D].set(jnp.transpose(x_btd, (1, 0, 2)))
    x_flat = x_tm.reshape(T * Bp, Dp)

    kernel = functools.partial(lstm_regressor_kernel, seq_len=T, batch_pad=Bp,
                               hidden=H, offs=offs)

    # (6) Advisory cost estimate for XLA scheduling around the custom call.
    flops = (2 * T * Bp * Dp * G          # input projection
             + T * 2 * Bp * H * G         # recurrent matmuls
             + 2 * Bp * H * G + 4 * Bp * G)  # head
    transcendentals = T * Bp * (G + H)
    bytes_accessed = (x_flat.size + pk.size + Bp) * 4

    vmem = pl.BlockSpec(memory_space=pltpu.MemorySpace.VMEM)
    out_pad = pl.pallas_call(
        kernel,
        out_shape=jax.ShapeDtypeStruct((Bp, 1), jnp.float32),
        in_specs=[vmem, vmem],
        out_specs=vmem,
        cost_estimate=pl.CostEstimate(flops=flops,
                                      transcendentals=transcendentals,
                                      bytes_accessed=bytes_accessed),
    )(x_flat, pk)
    return out_pad[:B, :]


def init_params(key, input_size, hidden_size=32, dense_size=16):
    """Deterministic synthetic parameters (matching nn.LSTM / nn.Linear shapes)."""
    ks = jax.random.split(key, 8)
    s = 1.0 / jnp.sqrt(hidden_size)
    # PyTorch stores weight_ih_l0 as (4H, D); we keep the right-multiply transpose.
    wih = jax.random.uniform(ks[0], (input_size, 4 * hidden_size), jnp.float32, -s, s)
    whh = jax.random.uniform(ks[1], (hidden_size, 4 * hidden_size), jnp.float32, -s, s)
    b_ih = jax.random.uniform(ks[2], (4 * hidden_size,), jnp.float32, -s, s)
    b_hh = jax.random.uniform(ks[3], (4 * hidden_size,), jnp.float32, -s, s)
    w1 = jax.random.uniform(ks[4], (hidden_size, dense_size), jnp.float32, -s, s)
    b1 = jax.random.uniform(ks[5], (dense_size,), jnp.float32, -s, s)
    sd = 1.0 / jnp.sqrt(dense_size)
    w2 = jax.random.uniform(ks[6], (dense_size, 1), jnp.float32, -sd, sd)
    b2 = jax.random.uniform(ks[7], (1,), jnp.float32, -sd, sd)
    return {
        "wih": wih, "whh": whh, "b": (b_ih + b_hh).reshape(1, -1),
        "w1": w1, "b1": b1.reshape(1, -1),
        "w2": w2, "b2": b2.reshape(1, 1),
    }


def reference_forward(x_btd, params):
    """Pure-JAX f32 reference of the PyTorch forward (correctness check)."""
    B, T, D = x_btd.shape
    H = params["whh"].shape[0]
    h = jnp.zeros((B, H), jnp.float32)
    c = jnp.zeros((B, H), jnp.float32)
    for t in range(T):
        gates = x_btd[:, t, :] @ params["wih"] + h @ params["whh"] + params["b"]
        i = jax.nn.sigmoid(gates[:, 0 * H:1 * H])
        f = jax.nn.sigmoid(gates[:, 1 * H:2 * H])
        g = jnp.tanh(gates[:, 2 * H:3 * H])
        o = jax.nn.sigmoid(gates[:, 3 * H:4 * H])
        c = f * c + i * g
        h = o * jnp.tanh(c)
    d1 = jnp.maximum(h @ params["w1"] + params["b1"], 0.0)
    return d1 @ params["w2"] + params["b2"]


if __name__ == "__main__":
    B, T, D = 2, 8, 4          # batch, seq_len, input_size
    H, DENSE = 32, 16          # hidden_size, dense_size

    key = jax.random.PRNGKey(0)
    kx, kp = jax.random.split(key)
    x = jax.random.normal(kx, (B, T, D), dtype=jnp.float32)
    params = init_params(kp, D, H, DENSE)

    out = jax.block_until_ready(lstm_regressor_forward(x, params))
    ref = reference_forward(x, params)

    assert out.shape == (B, 1)
    # bf16 MXU operands on the recurrent matmul relax bit-level parity.
    assert jnp.allclose(out, ref, atol=5e-3, rtol=5e-3), (out, ref)

    print("KERNEL_OK")
</pallas_src>

<mosaic_0001>
module attributes {stable_mosaic.version = 11 : i64} {
  func.func @lstm_regressor_kernel(%arg0: memref<64x8xf32, #tpu.memory_space<vmem>>, %arg1: memref<88x128xf32, #tpu.memory_space<vmem>>, %arg2: memref<8x1xf32, #tpu.memory_space<vmem>>) attributes {dimension_semantics = [], scalar_prefetch = 0 : i64, scratch_operands = 0 : i64, tpu.core_type = #tpu.core_type<tc>} {
    %c0 = arith.constant 0 : index
    %c0_0 = arith.constant 0 : index
    %0 = vector.load %arg1[%c0, %c0_0] : memref<88x128xf32, #tpu.memory_space<vmem>>, vector<8x128xf32>
    %c8 = arith.constant 8 : index
    %c0_1 = arith.constant 0 : index
    %1 = vector.load %arg1[%c8, %c0_1] : memref<88x128xf32, #tpu.memory_space<vmem>>, vector<32x128xf32>
    %c40 = arith.constant 40 : index
    %c0_2 = arith.constant 0 : index
    %2 = vector.load %arg1[%c40, %c0_2] : memref<88x128xf32, #tpu.memory_space<vmem>>, vector<1x128xf32>
    %c48 = arith.constant 48 : index
    %c0_3 = arith.constant 0 : index
    %3 = vector.load %arg1[%c48, %c0_3] : memref<88x128xf32, #tpu.memory_space<vmem>>, vector<32x128xf32>
    %c80 = arith.constant 80 : index
    %c0_4 = arith.constant 0 : index
    %4 = vector.load %arg1[%c80, %c0_4] : memref<88x128xf32, #tpu.memory_space<vmem>>, vector<1x128xf32>
    %c81 = arith.constant 81 : index
    %c0_5 = arith.constant 0 : index
    %5 = vector.load %arg1[%c81, %c0_5] : memref<88x128xf32, #tpu.memory_space<vmem>>, vector<1x128xf32>
    %c82 = arith.constant 82 : index
    %c0_6 = arith.constant 0 : index
    %6 = vector.load %arg1[%c82, %c0_6] : memref<88x128xf32, #tpu.memory_space<vmem>>, vector<1x128xf32>
    %c0_7 = arith.constant 0 : index
    %c0_8 = arith.constant 0 : index
    %7 = vector.load %arg0[%c0_7, %c0_8] : memref<64x8xf32, #tpu.memory_space<vmem>>, vector<64x8xf32>
    %cst = arith.constant dense<0.000000e+00> : vector<64x128xf32>
    %8 = tpu.matmul %7, %0, %cst {dimension_numbers = #tpu.dot_dimension_numbers<[1], [0], [0], [1], [0, 0, 1, 1], [], []>} : vector<64x8xf32>, vector<8x128xf32>, vector<64x128xf32> -> vector<64x128xf32>
    %9 = vector.broadcast %2 : vector<1x128xf32> to vector<64x128xf32>
    %10 = arith.addf %8, %9 : vector<64x128xf32>
    %11 = arith.truncf %1 : vector<32x128xf32> to vector<32x128xbf16>
    %12 = tpu.iota {dimensions = array<i32: 1>} : vector<8x128xi32>
    %c64_i32 = arith.constant 64 : i32
    %13 = vector.broadcast %c64_i32 : i32 to vector<8x128xi32>
    %14 = arith.cmpi sge, %12, %13 : vector<8x128xi32>
    %c96_i32 = arith.constant 96 : i32
    %15 = vector.broadcast %c96_i32 : i32 to vector<8x128xi32>
    %16 = arith.cmpi slt, %12, %15 : vector<8x128xi32>
    %17 = arith.andi %14, %16 : vector<8x128xi1>
    %cst_9 = arith.constant 0.000000e+00 : f32
    %18 = vector.broadcast %cst_9 : f32 to vector<8x32xf32>
    %cst_10 = arith.constant 0.000000e+00 : f32
    %19 = vector.broadcast %cst_10 : f32 to vector<8x32xf32>
    %20 = vector.extract_strided_slice %10 {offsets = [0, 0], sizes = [8, 128], strides = [1, 1]} : vector<64x128xf32> to vector<8x128xf32>
    %21 = arith.truncf %18 : vector<8x32xf32> to vector<8x32xbf16>
    %cst_11 = arith.constant dense<0.000000e+00> : vector<8x128xf32>
    %22 = tpu.matmul %21, %11, %cst_11 {dimension_numbers = #tpu.dot_dimension_numbers<[1], [0], [0], [1], [0, 0, 1, 1], [], []>} : vector<8x32xbf16>, vector<32x128xbf16>, vector<8x128xf32> -> vector<8x128xf32>
    %23 = arith.addf %20, %22 : vector<8x128xf32>
    %cst_12 = arith.constant 5.000000e-01 : f32
    %24 = vector.broadcast %cst_12 : f32 to vector<8x128xf32>
    %25 = arith.mulf %24, %23 : vector<8x128xf32>
    %26 = arith.select %17, %23, %25 : vector<8x128xi1>, vector<8x128xf32>
    %27 = math.tanh %26 : vector<8x128xf32>
    %cst_13 = arith.constant 5.000000e-01 : f32
    %28 = vector.broadcast %cst_13 : f32 to vector<8x128xf32>
    %29 = arith.mulf %28, %27 : vector<8x128xf32>
    %cst_14 = arith.constant 5.000000e-01 : f32
    %30 = vector.broadcast %cst_14 : f32 to vector<8x128xf32>
    %31 = arith.addf %29, %30 : vector<8x128xf32>
    %32 = arith.select %17, %27, %31 : vector<8x128xi1>, vector<8x128xf32>
    %33 = vector.extract_strided_slice %32 {offsets = [0, 0], sizes = [8, 32], strides = [1, 1]} : vector<8x128xf32> to vector<8x32xf32>
    %34 = vector.extract_strided_slice %32 {offsets = [0, 32], sizes = [8, 32], strides = [1, 1]} : vector<8x128xf32> to vector<8x32xf32>
    %35 = vector.extract_strided_slice %32 {offsets = [0, 64], sizes = [8, 32], strides = [1, 1]} : vector<8x128xf32> to vector<8x32xf32>
    %36 = vector.extract_strided_slice %32 {offsets = [0, 96], sizes = [8, 32], strides = [1, 1]} : vector<8x128xf32> to vector<8x32xf32>
    %37 = arith.mulf %34, %19 : vector<8x32xf32>
    %38 = arith.mulf %33, %35 : vector<8x32xf32>
    %39 = arith.addf %37, %38 : vector<8x32xf32>
    %40 = math.tanh %39 : vector<8x32xf32>
    %41 = arith.mulf %36, %40 : vector<8x32xf32>
    %42 = vector.extract_strided_slice %10 {offsets = [8, 0], sizes = [8, 128], strides = [1, 1]} : vector<64x128xf32> to vector<8x128xf32>
    %43 = arith.truncf %41 : vector<8x32xf32> to vector<8x32xbf16>
    %cst_15 = arith.constant dense<0.000000e+00> : vector<8x128xf32>
    %44 = tpu.matmul %43, %11, %cst_15 {dimension_numbers = #tpu.dot_dimension_numbers<[1], [0], [0], [1], [0, 0, 1, 1], [], []>} : vector<8x32xbf16>, vector<32x128xbf16>, vector<8x128xf32> -> vector<8x128xf32>
    %45 = arith.addf %42, %44 : vector<8x128xf32>
    %cst_16 = arith.constant 5.000000e-01 : f32
    %46 = vector.broadcast %cst_16 : f32 to vector<8x128xf32>
    %47 = arith.mulf %46, %45 : vector<8x128xf32>
    %48 = arith.select %17, %45, %47 : vector<8x128xi1>, vector<8x128xf32>
    %49 = math.tanh %48 : vector<8x128xf32>
    %cst_17 = arith.constant 5.000000e-01 : f32
    %50 = vector.broadcast %cst_17 : f32 to vector<8x128xf32>
    %51 = arith.mulf %50, %49 : vector<8x128xf32>
    %cst_18 = arith.constant 5.000000e-01 : f32
    %52 = vector.broadcast %cst_18 : f32 to vector<8x128xf32>
    %53 = arith.addf %51, %52 : vector<8x128xf32>
    %54 = arith.select %17, %49, %53 : vector<8x128xi1>, vector<8x128xf32>
    %55 = vector.extract_strided_slice %54 {offsets = [0, 0], sizes = [8, 32], strides = [1, 1]} : vector<8x128xf32> to vector<8x32xf32>
    %56 = vector.extract_strided_slice %54 {offsets = [0, 32], sizes = [8, 32], strides = [1, 1]} : vector<8x128xf32> to vector<8x32xf32>
    %57 = vector.extract_strided_slice %54 {offsets = [0, 64], sizes = [8, 32], strides = [1, 1]} : vector<8x128xf32> to vector<8x32xf32>
    %58 = vector.extract_strided_slice %54 {offsets = [0, 96], sizes = [8, 32], strides = [1, 1]} : vector<8x128xf32> to vector<8x32xf32>
    %59 = arith.mulf %56, %39 : vector<8x32xf32>
    %60 = arith.mulf %55, %57 : vector<8x32xf32>
    %61 = arith.addf %59, %60 : vector<8x32xf32>
    %62 = math.tanh %61 : vector<8x32xf32>
    %63 = arith.mulf %58, %62 : vector<8x32xf32>
    %64 = vector.extract_strided_slice %10 {offsets = [16, 0], sizes = [8, 128], strides = [1, 1]} : vector<64x128xf32> to vector<8x128xf32>
    %65 = arith.truncf %63 : vector<8x32xf32> to vector<8x32xbf16>
    %cst_19 = arith.constant dense<0.000000e+00> : vector<8x128xf32>
    %66 = tpu.matmul %65, %11, %cst_19 {dimension_numbers = #tpu.dot_dimension_numbers<[1], [0], [0], [1], [0, 0, 1, 1], [], []>} : vector<8x32xbf16>, vector<32x128xbf16>, vector<8x128xf32> -> vector<8x128xf32>
    %67 = arith.addf %64, %66 : vector<8x128xf32>
    %cst_20 = arith.constant 5.000000e-01 : f32
    %68 = vector.broadcast %cst_20 : f32 to vector<8x128xf32>
    %69 = arith.mulf %68, %67 : vector<8x128xf32>
    %70 = arith.select %17, %67, %69 : vector<8x128xi1>, vector<8x128xf32>
    %71 = math.tanh %70 : vector<8x128xf32>
    %cst_21 = arith.constant 5.000000e-01 : f32
    %72 = vector.broadcast %cst_21 : f32 to vector<8x128xf32>
    %73 = arith.mulf %72, %71 : vector<8x128xf32>
    %cst_22 = arith.constant 5.000000e-01 : f32
    %74 = vector.broadcast %cst_22 : f32 to vector<8x128xf32>
    %75 = arith.addf %73, %74 : vector<8x128xf32>
    %76 = arith.select %17, %71, %75 : vector<8x128xi1>, vector<8x128xf32>
    %77 = vector.extract_strided_slice %76 {offsets = [0, 0], sizes = [8, 32], strides = [1, 1]} : vector<8x128xf32> to vector<8x32xf32>
    %78 = vector.extract_strided_slice %76 {offsets = [0, 32], sizes = [8, 32], strides = [1, 1]} : vector<8x128xf32> to vector<8x32xf32>
    %79 = vector.extract_strided_slice %76 {offsets = [0, 64], sizes = [8, 32], strides = [1, 1]} : vector<8x128xf32> to vector<8x32xf32>
    %80 = vector.extract_strided_slice %76 {offsets = [0, 96], sizes = [8, 32], strides = [1, 1]} : vector<8x128xf32> to vector<8x32xf32>
    %81 = arith.mulf %78, %61 : vector<8x32xf32>
    %82 = arith.mulf %77, %79 : vector<8x32xf32>
    %83 = arith.addf %81, %82 : vector<8x32xf32>
    %84 = math.tanh %83 : vector<8x32xf32>
    %85 = arith.mulf %80, %84 : vector<8x32xf32>
    %86 = vector.extract_strided_slice %10 {offsets = [24, 0], sizes = [8, 128], strides = [1, 1]} : vector<64x128xf32> to vector<8x128xf32>
    %87 = arith.truncf %85 : vector<8x32xf32> to vector<8x32xbf16>
    %cst_23 = arith.constant dense<0.000000e+00> : vector<8x128xf32>
    %88 = tpu.matmul %87, %11, %cst_23 {dimension_numbers = #tpu.dot_dimension_numbers<[1], [0], [0], [1], [0, 0, 1, 1], [], []>} : vector<8x32xbf16>, vector<32x128xbf16>, vector<8x128xf32> -> vector<8x128xf32>
    %89 = arith.addf %86, %88 : vector<8x128xf32>
    %cst_24 = arith.constant 5.000000e-01 : f32
    %90 = vector.broadcast %cst_24 : f32 to vector<8x128xf32>
    %91 = arith.mulf %90, %89 : vector<8x128xf32>
    %92 = arith.select %17, %89, %91 : vector<8x128xi1>, vector<8x128xf32>
    %93 = math.tanh %92 : vector<8x128xf32>
    %cst_25 = arith.constant 5.000000e-01 : f32
    %94 = vector.broadcast %cst_25 : f32 to vector<8x128xf32>
    %95 = arith.mulf %94, %93 : vector<8x128xf32>
    %cst_26 = arith.constant 5.000000e-01 : f32
    %96 = vector.broadcast %cst_26 : f32 to vector<8x128xf32>
    %97 = arith.addf %95, %96 : vector<8x128xf32>
    %98 = arith.select %17, %93, %97 : vector<8x128xi1>, vector<8x128xf32>
    %99 = vector.extract_strided_slice %98 {offsets = [0, 0], sizes = [8, 32], strides = [1, 1]} : vector<8x128xf32> to vector<8x32xf32>
    %100 = vector.extract_strided_slice %98 {offsets = [0, 32], sizes = [8, 32], strides = [1, 1]} : vector<8x128xf32> to vector<8x32xf32>
    %101 = vector.extract_strided_slice %98 {offsets = [0, 64], sizes = [8, 32], strides = [1, 1]} : vector<8x128xf32> to vector<8x32xf32>
    %102 = vector.extract_strided_slice %98 {offsets = [0, 96], sizes = [8, 32], strides = [1, 1]} : vector<8x128xf32> to vector<8x32xf32>
    %103 = arith.mulf %100, %83 : vector<8x32xf32>
    %104 = arith.mulf %99, %101 : vector<8x32xf32>
    %105 = arith.addf %103, %104 : vector<8x32xf32>
    %106 = math.tanh %105 : vector<8x32xf32>
    %107 = arith.mulf %102, %106 : vector<8x32xf32>
    %108 = vector.extract_strided_slice %10 {offsets = [32, 0], sizes = [8, 128], strides = [1, 1]} : vector<64x128xf32> to vector<8x128xf32>
    %109 = arith.truncf %107 : vector<8x32xf32> to vector<8x32xbf16>
    %cst_27 = arith.constant dense<0.000000e+00> : vector<8x128xf32>
    %110 = tpu.matmul %109, %11, %cst_27 {dimension_numbers = #tpu.dot_dimension_numbers<[1], [0], [0], [1], [0, 0, 1, 1], [], []>} : vector<8x32xbf16>, vector<32x128xbf16>, vector<8x128xf32> -> vector<8x128xf32>
    %111 = arith.addf %108, %110 : vector<8x128xf32>
    %cst_28 = arith.constant 5.000000e-01 : f32
    %112 = vector.broadcast %cst_28 : f32 to vector<8x128xf32>
    %113 = arith.mulf %112, %111 : vector<8x128xf32>
    %114 = arith.select %17, %111, %113 : vector<8x128xi1>, vector<8x128xf32>
    %115 = math.tanh %114 : vector<8x128xf32>
    %cst_29 = arith.constant 5.000000e-01 : f32
    %116 = vector.broadcast %cst_29 : f32 to vector<8x128xf32>
    %117 = arith.mulf %116, %115 : vector<8x128xf32>
    %cst_30 = arith.constant 5.000000e-01 : f32
    %118 = vector.broadcast %cst_30 : f32 to vector<8x128xf32>
    %119 = arith.addf %117, %118 : vector<8x128xf32>
    %120 = arith.select %17, %115, %119 : vector<8x128xi1>, vector<8x128xf32>
    %121 = vector.extract_strided_slice %120 {offsets = [0, 0], sizes = [8, 32], strides = [1, 1]} : vector<8x128xf32> to vector<8x32xf32>
    %122 = vector.extract_strided_slice %120 {offsets = [0, 32], sizes = [8, 32], strides = [1, 1]} : vector<8x128xf32> to vector<8x32xf32>
    %123 = vector.extract_strided_slice %120 {offsets = [0, 64], sizes = [8, 32], strides = [1, 1]} : vector<8x128xf32> to vector<8x32xf32>
    %124 = vector.extract_strided_slice %120 {offsets = [0, 96], sizes = [8, 32], strides = [1, 1]} : vector<8x128xf32> to vector<8x32xf32>
    %125 = arith.mulf %122, %105 : vector<8x32xf32>
    %126 = arith.mulf %121, %123 : vector<8x32xf32>
    %127 = arith.addf %125, %126 : vector<8x32xf32>
    %128 = math.tanh %127 : vector<8x32xf32>
    %129 = arith.mulf %124, %128 : vector<8x32xf32>
    %130 = vector.extract_strided_slice %10 {offsets = [40, 0], sizes = [8, 128], strides = [1, 1]} : vector<64x128xf32> to vector<8x128xf32>
    %131 = arith.truncf %129 : vector<8x32xf32> to vector<8x32xbf16>
    %cst_31 = arith.constant dense<0.000000e+00> : vector<8x128xf32>
    %132 = tpu.matmul %131, %11, %cst_31 {dimension_numbers = #tpu.dot_dimension_numbers<[1], [0], [0], [1], [0, 0, 1, 1], [], []>} : vector<8x32xbf16>, vector<32x128xbf16>, vector<8x128xf32> -> vector<8x128xf32>
    %133 = arith.addf %130, %132 : vector<8x128xf32>
    %cst_32 = arith.constant 5.000000e-01 : f32
    %134 = vector.broadcast %cst_32 : f32 to vector<8x128xf32>
    %135 = arith.mulf %134, %133 : vector<8x128xf32>
    %136 = arith.select %17, %133, %135 : vector<8x128xi1>, vector<8x128xf32>
    %137 = math.tanh %136 : vector<8x128xf32>
    %cst_33 = arith.constant 5.000000e-01 : f32
    %138 = vector.broadcast %cst_33 : f32 to vector<8x128xf32>
    %139 = arith.mulf %138, %137 : vector<8x128xf32>
    %cst_34 = arith.constant 5.000000e-01 : f32
    %140 = vector.broadcast %cst_34 : f32 to vector<8x128xf32>
    %141 = arith.addf %139, %140 : vector<8x128xf32>
    %142 = arith.select %17, %137, %141 : vector<8x128xi1>, vector<8x128xf32>
    %143 = vector.extract_strided_slice %142 {offsets = [0, 0], sizes = [8, 32], strides = [1, 1]} : vector<8x128xf32> to vector<8x32xf32>
    %144 = vector.extract_strided_slice %142 {offsets = [0, 32], sizes = [8, 32], strides = [1, 1]} : vector<8x128xf32> to vector<8x32xf32>
    %145 = vector.extract_strided_slice %142 {offsets = [0, 64], sizes = [8, 32], strides = [1, 1]} : vector<8x128xf32> to vector<8x32xf32>
    %146 = vector.extract_strided_slice %142 {offsets = [0, 96], sizes = [8, 32], strides = [1, 1]} : vector<8x128xf32> to vector<8x32xf32>
    %147 = arith.mulf %144, %127 : vector<8x32xf32>
    %148 = arith.mulf %143, %145 : vector<8x32xf32>
    %149 = arith.addf %147, %148 : vector<8x32xf32>
    %150 = math.tanh %149 : vector<8x32xf32>
    %151 = arith.mulf %146, %150 : vector<8x32xf32>
    %152 = vector.extract_strided_slice %10 {offsets = [48, 0], sizes = [8, 128], strides = [1, 1]} : vector<64x128xf32> to vector<8x128xf32>
    %153 = arith.truncf %151 : vector<8x32xf32> to vector<8x32xbf16>
    %cst_35 = arith.constant dense<0.000000e+00> : vector<8x128xf32>
    %154 = tpu.matmul %153, %11, %cst_35 {dimension_numbers = #tpu.dot_dimension_numbers<[1], [0], [0], [1], [0, 0, 1, 1], [], []>} : vector<8x32xbf16>, vector<32x128xbf16>, vector<8x128xf32> -> vector<8x128xf32>
    %155 = arith.addf %152, %154 : vector<8x128xf32>
    %cst_36 = arith.constant 5.000000e-01 : f32
    %156 = vector.broadcast %cst_36 : f32 to vector<8x128xf32>
    %157 = arith.mulf %156, %155 : vector<8x128xf32>
    %158 = arith.select %17, %155, %157 : vector<8x128xi1>, vector<8x128xf32>
    %159 = math.tanh %158 : vector<8x128xf32>
    %cst_37 = arith.constant 5.000000e-01 : f32
    %160 = vector.broadcast %cst_37 : f32 to vector<8x128xf32>
    %161 = arith.mulf %160, %159 : vector<8x128xf32>
    %cst_38 = arith.constant 5.000000e-01 : f32
    %162 = vector.broadcast %cst_38 : f32 to vector<8x128xf32>
    %163 = arith.addf %161, %162 : vector<8x128xf32>
    %164 = arith.select %17, %159, %163 : vector<8x128xi1>, vector<8x128xf32>
    %165 = vector.extract_strided_slice %164 {offsets = [0, 0], sizes = [8, 32], strides = [1, 1]} : vector<8x128xf32> to vector<8x32xf32>
    %166 = vector.extract_strided_slice %164 {offsets = [0, 32], sizes = [8, 32], strides = [1, 1]} : vector<8x128xf32> to vector<8x32xf32>
    %167 = vector.extract_strided_slice %164 {offsets = [0, 64], sizes = [8, 32], strides = [1, 1]} : vector<8x128xf32> to vector<8x32xf32>
    %168 = vector.extract_strided_slice %164 {offsets = [0, 96], sizes = [8, 32], strides = [1, 1]} : vector<8x128xf32> to vector<8x32xf32>
    %169 = arith.mulf %166, %149 : vector<8x32xf32>
    %170 = arith.mulf %165, %167 : vector<8x32xf32>
    %171 = arith.addf %169, %170 : vector<8x32xf32>
    %172 = math.tanh %171 : vector<8x32xf32>
    %173 = arith.mulf %168, %172 : vector<8x32xf32>
    %174 = vector.extract_strided_slice %10 {offsets = [56, 0], sizes = [8, 128], strides = [1, 1]} : vector<64x128xf32> to vector<8x128xf32>
    %175 = arith.truncf %173 : vector<8x32xf32> to vector<8x32xbf16>
    %cst_39 = arith.constant dense<0.000000e+00> : vector<8x128xf32>
    %176 = tpu.matmul %175, %11, %cst_39 {dimension_numbers = #tpu.dot_dimension_numbers<[1], [0], [0], [1], [0, 0, 1, 1], [], []>} : vector<8x32xbf16>, vector<32x128xbf16>, vector<8x128xf32> -> vector<8x128xf32>
    %177 = arith.addf %174, %176 : vector<8x128xf32>
    %cst_40 = arith.constant 5.000000e-01 : f32
    %178 = vector.broadcast %cst_40 : f32 to vector<8x128xf32>
    %179 = arith.mulf %178, %177 : vector<8x128xf32>
    %180 = arith.select %17, %177, %179 : vector<8x128xi1>, vector<8x128xf32>
    %181 = math.tanh %180 : vector<8x128xf32>
    %cst_41 = arith.constant 5.000000e-01 : f32
    %182 = vector.broadcast %cst_41 : f32 to vector<8x128xf32>
    %183 = arith.mulf %182, %181 : vector<8x128xf32>
    %cst_42 = arith.constant 5.000000e-01 : f32
    %184 = vector.broadcast %cst_42 : f32 to vector<8x128xf32>
    %185 = arith.addf %183, %184 : vector<8x128xf32>
    %186 = arith.select %17, %181, %185 : vector<8x128xi1>, vector<8x128xf32>
    %187 = vector.extract_strided_slice %186 {offsets = [0, 0], sizes = [8, 32], strides = [1, 1]} : vector<8x128xf32> to vector<8x32xf32>
    %188 = vector.extract_strided_slice %186 {offsets = [0, 32], sizes = [8, 32], strides = [1, 1]} : vector<8x128xf32> to vector<8x32xf32>
    %189 = vector.extract_strided_slice %186 {offsets = [0, 64], sizes = [8, 32], strides = [1, 1]} : vector<8x128xf32> to vector<8x32xf32>
    %190 = vector.extract_strided_slice %186 {offsets = [0, 96], sizes = [8, 32], strides = [1, 1]} : vector<8x128xf32> to vector<8x32xf32>
    %191 = arith.mulf %188, %171 : vector<8x32xf32>
    %192 = arith.mulf %187, %189 : vector<8x32xf32>
    %193 = arith.addf %191, %192 : vector<8x32xf32>
    %194 = math.tanh %193 : vector<8x32xf32>
    %195 = arith.mulf %190, %194 : vector<8x32xf32>
    %cst_43 = arith.constant dense<0.000000e+00> : vector<8x128xf32>
    %196 = tpu.matmul %195, %3, %cst_43 {dimension_numbers = #tpu.dot_dimension_numbers<[1], [0], [0], [1], [0, 0, 1, 1], [], []>} : vector<8x32xf32>, vector<32x128xf32>, vector<8x128xf32> -> vector<8x128xf32>
    %197 = vector.broadcast %4 : vector<1x128xf32> to vector<8x128xf32>
    %198 = arith.addf %196, %197 : vector<8x128xf32>
    %cst_44 = arith.constant 0.000000e+00 : f32
    %199 = vector.broadcast %cst_44 : f32 to vector<8x128xf32>
    %200 = arith.maximumf %198, %199 : vector<8x128xf32>
    %201 = vector.broadcast %5 : vector<1x128xf32> to vector<8x128xf32>
    %202 = arith.mulf %200, %201 : vector<8x128xf32>
    %cst_45 = arith.constant dense<0.000000e+00> : vector<8xf32>
    %203 = vector.multi_reduction <add>, %202, %cst_45 [1] : vector<8x128xf32> to vector<8xf32>
    %204 = vector.shape_cast %203 : vector<8xf32> to vector<8x1xf32>
    %205 = vector.extract_strided_slice %6 {offsets = [0, 0], sizes = [1, 1], strides = [1, 1]} : vector<1x128xf32> to vector<1x1xf32>
    %206 = vector.broadcast %205 : vector<1x1xf32> to vector<8x1xf32>
    %207 = arith.addf %204, %206 : vector<8x1xf32>
    %c0_46 = arith.constant 0 : index
    %c0_47 = arith.constant 0 : index
    %208 = vector.load %arg2[%c0_46, %c0_47] : memref<8x1xf32, #tpu.memory_space<vmem>>, vector<8x1xf32>
    tpu.vector_store %arg2[%c0_46, %c0_47], %207 {strides = array<i32>} : memref<8x1xf32, #tpu.memory_space<vmem>>, vector<8x1xf32>,
    return
  }
}

</mosaic_0001>

<bundles_post_ra>
// kernel: tpu_custom_call.1
= control target key start
LH: loop header
LB: loop body
LE: loop exit
PB: predicated region body
PF: predicated region fallthrough
CT: control target
= control target key end

     0   :  { %7 = vsyncpa [#allocation3], 0  ;;  %s1070_s9 = smov [#allocation2]   ;;  %s1293_s0 = inlined_call_operand.vmem [shape: f32[64,8], index: 0, kind: input, shape index: {}]   ;;  %s1294_s1 = inlined_call_operand.hbm [shape: f32[88,128], index: 1, kind: input, shape index: {}]   ;;  %s1295_s2 = inlined_call_operand.vmem [shape: f32[8,1], index: 2, kind: output, shape index: {}]  }
   0x1   :  { %s15_s10 = sshll.u32 %s1070_s9, 4  ;;  %s1046_s13 = scalar_lea.hbm %s1294_s1, 1408  ;;  %s16_s10 = int_to_ptr.vmem [resolvable:$true] %s15_s10 }
   0x2   :  { %p1047_p0 = scmp.ne.s32.totalorder %s1294_s1, %s1046_s13  ;;  %p1050_p1 = scmp.lt.u32.totalorder %s1046_s13, %s1294_s1 }
   0x4   :  { %p1052_p2 = pnand %p1050_p1, %p1047_p0 }
   0x6   :  { %1055 = shalt.err (!%p1052_p2)
}
   0x7   :  { %s1056_s18 = scalar_lea.vmem %s16_s10, 1408  ;;  %p1061_p4 = scmp.lt.s32.totalorder %s16_s10, %s16_s10 }
   0x8   :  { %p1057_p3 = scmp.ne.s32.totalorder %s16_s10, %s1056_s18  ;;  %p1062_p5 = scmp.lt.s32.totalorder %s1056_s18, %s1056_s18 }
   0xa   :  { %p1063_p6 = por %p1062_p5, %p1061_p4 }
   0xc   :  { %p1064_p7 = pnand %p1063_p6, %p1057_p3 }
   0xe   :  { %1067 = shalt.err (!%p1064_p7)
}
   0xf   :  { %s1071_s19 = smov 128   ;;  %s1072_s20 = smov 8  }
  0x10   :  { %21 = dma.hbm_to_vmem [thread:$0]  %s1294_s1, 1408, %s16_s10, [#allocation3], %s1071_s19, %s1071_s19, %s1072_s20  }
  0x11   :  { %1068 = dma.done.wait [#allocation3], 1408  }
  0x12   :  { %1069 = vsyncadd [#allocation3], 4294965888  ;;  %v1073_v0 = vmov 0.0   ;;  %vm1074_vm0 = vmmov 0   ;;  %vm51_vm1 = vcmask 64512   ;;  %v27_v1 = vld [vmem:[#allocation2 + $0x8] sm:$0xff]  ;;  %v183_v11 = vlaneseq }
  0x13   :  { %924 = vmatprep.subr.bf16.mxu1 %v1073_v0  ;;  %928 = vmatprep.mubr.msk.bf16.mxu1 %vm1074_vm0, %v1073_v0  ;;  %v28_v2 = vld [vmem:[#allocation2 + $0x10] sm:$0xff]  ;;  %v26_v3 = vld [vmem:[#allocation2] sm:$0xff]  ;;  %v40_v6 = vld [vmem:[%s1293_s0 + $0x8] sm:$0xff]  ;;  %v1075_v10 = vmov 0   ;;  %s1076_s26 = smov 64   ;;  %s1077_s27 = smov 32  }
  0x14   :  { %v1109_v4 = vpack.c.bf16 %v28_v2, %v27_v1  ;;  %910 = vmatprep.subr.mxu0 %v26_v3  ;;  %v39_v5 = vld [vmem:[%s1293_s0] sm:$0xff]  ;;  %v29_v7 = vld [vmem:[#allocation2 + $0x18] sm:$0xff]  ;;  %v1136_v13 = vld [vmem:[#allocation2 + $0x28] ss:$0 sm:$0xff]  ;;  %v184_v15 = vand.u32 127, %v183_v11  ;;  %vm188_vm5 = vcmask 261120  }
  0x15   :  { %911 = vmatpush3.msra.mxu0 %v26_v3  ;;  %912 = vmatprep.mubr.msk.f32.mxu0 %vm51_vm1, %v39_v5  ;;  %v30_v8 = vld [vmem:[#allocation2 + $0x20] sm:$0xff]  ;;  %v41_v56 = vld [vmem:[%s1293_s0 + $0x10] sm:$0xff]  ;;  %v42_v57 = vld [vmem:[%s1293_s0 + $0x18] sm:$0xff]  ;;  %vm845_vm6 = vcmask 7168  }
  0x16   :  { %925 = vmatpush3.bf16.msra.mxu1 %v1109_v4  ;;  %913 = vmatmul.mubr.msk.f32.vlgmr.msra.gmra.mrb[0].mxu0 %vm51_vm1, %v40_v6  ;;  %v1120_v9 = vpack.c.bf16 %v30_v8, %v29_v7  ;;  %vm185_vm2 = vcmp.ge.s32.totalorder %v184_v15, 64  ;;  %vm186_vm3 = vcmp.lt.s32.totalorder %v184_v15, 96  ;;  %v43_v58 = vld [vmem:[%s1293_s0 + $0x20] sm:$0xff]  ;;  %v44_v59 = vld [vmem:[%s1293_s0 + $0x28] sm:$0xff]  ;;  %v45_v60 = vld [vmem:[%s1293_s0 + $0x30] sm:$0xff] }
  0x17   :  { %926 = vmatprep.subr.bf16.mxu1 %v1073_v0  ;;  %940 = vmatprep.subr.bf16.mxu0 %v1073_v0  ;;  %vm1139_vm4 = vmand %vm185_vm2, %vm186_vm3  ;;  %v46_v61 = vld [vmem:[%s1293_s0 + $0x38] sm:$0xff] }
  0x18   :  { %941 = vmatpush3.bf16.msra.mxu0 %v1109_v4  ;;  %915 = vmatprep.mubr.msk.f32.mxu0 %vm51_vm1, %v41_v56 }
  0x19   :  { %942 = vmatprep.subr.bf16.mxu0 %v1073_v0 }
  0x1a   :  { %927 = vmatpush3.bf16.msra.mxu1 %v1120_v9  ;;  %916 = vmatmul.mubr.msk.f32.gmra.mrb[2].mxu0 %vm51_vm1, %v42_v57 }
  0x1b   :  { %932 = vmatprep.subr.bf16.mxu1 %v1073_v0  ;;  %918 = vmatprep.mubr.msk.f32.mxu0 %vm51_vm1, %v43_v58 }
  0x1c   :  { %943 = vmatpush3.bf16.msra.mxu0 %v1120_v9 }
  0x1d   :  { %929 = vmatmul.mubr.bf16.vlgmr.msra.gmra.mrb[0].mxu1 %v1075_v10  ;;  %956 = vmatprep.subr.bf16.mxu0 %v1073_v0 }
  0x1e   :  { %933 = vmatpush3.bf16.msra.mxu1 %v1109_v4  ;;  %936 = vmatprep.mubr.msk.bf16.mxu1 %vm1074_vm0, %v1073_v0 }
  0x1f   :  { %934 = vmatprep.subr.bf16.mxu1 %v1073_v0  ;;  %919 = vmatmul.mubr.msk.f32.gmra.mrb[4].mxu0 %vm51_vm1, %v44_v59 }
  0x20   :  { %921 = vmatprep.mubr.msk.f32.mxu0 %vm51_vm1, %v45_v60 }
  0x22   :  { %935 = vmatpush3.bf16.msra.mxu1 %v1120_v9 }
  0x23   :  { %948 = vmatprep.subr.bf16.mxu1 %v1073_v0  ;;  %922 = vmatmul.mubr.msk.f32.gmra.mrb[6].mxu0 %vm51_vm1, %v46_v61 }
  0x24   :  { %944 = vmatprep.mubr.msk.bf16.mxu0 %vm1074_vm0, %v1073_v0 }
  0xe9   :  { %v914_v12 = vpop.f32.mrb[0].mxu0 }
  0xea   :  { %v142_v14 = vpop.f32.mrb[1].mxu0  ;;  %v148_v39 = vadd.f32 %v914_v12, %v1136_v13 }
  0xeb   :  { %v143_v16 = vadd.f32 %v1136_v13, %v142_v14 }
  0xed   :  { %v917_v3 = vpop.f32.mrb[2].mxu0 }
  0xee   :  { %v152_v5 = vpop.f32.mrb[3].mxu0 }
  0xef   :  { %v153_v12 = vadd.f32 %v1136_v13, %v152_v5 }
  0xf0   :  { %v226_v17 = vpop.f32.mrb[0].mxu1 }
  0xf1   :  { %v232_v18 = vadd.f32 %v226_v17, %v143_v16  ;;  %v930_v19 = vpop.f32.mrb[1].mxu1 }
  0xf2   :  { %v229_v21 = vpop.f32.mrb[2].mxu1  ;;  %v1193_v6 = vpop.f32.mrb[4].mxu0 }
  0xf3   :  { %v233_v22 = vmul.f32 0.5, %v232_v18  ;;  %v931_v23 = vpop.f32.mrb[3].mxu1  ;;  %v1195_v7 = vpop.f32.mrb[5].mxu0 }
  0xf4   :  { %v163_v58 = vadd.f32 %v1136_v13, %v1195_v7 }
  0xf5   :  { %v234_v24 = vsel %vm1139_vm4, %v232_v18, %v233_v22 }
  0xf6   :  { %1014 = vtanh.f32 %v234_v24  ;;  %v1197_v8 = vpop.f32.mrb[6].mxu0 }
  0xf7   :  { %v1199_v10 = vpop.f32.mrb[7].mxu0 }
 0x100   :  { %v1015_v25 = vpop.eup %1014 }
 0x101   :  { %v236_v26 = vmul.f32 0.5, %v1015_v25 }
 0x103   :  { %v237_v27 = vadd.f32 0.5, %v236_v26 }
 0x105   :  { %v238_v28 = vsel %vm1139_vm4, %v1015_v25, %v237_v27 }
 0x106   :  { %241 = vrot.lane.b32.xlu0 %v238_v28, %s1076_s26  ;;  %v239_v31 = vmul.f32 0.0, %v238_v28 }
 0x178   :  { %v242_v29 = vpop.permute.xlu0 %241 }
 0x179   :  { %v244_v30 = vmul.f32 %v242_v29, %v238_v28 }
 0x17b   :  { %246 = vrot.lane.b32.xlu0 %v244_v30, %s1077_s27 }
 0x1ed   :  { %v247_v32 = vpop.permute.xlu0 %246 }
 0x1ee   :  { %v249_v33 = vadd.f32 %v247_v32, %v239_v31 }
 0x1f0   :  { %1016 = vtanh.f32 %v249_v33 }
 0x1fa   :  { %v1017_v34 = vpop.eup %1016 }
 0x1fb   :  { %252 = vrot.lane.b32.xlu1 %v1017_v34, %s1076_s26 }
 0x26d   :  { %v253_v35 = vpop.permute.xlu1 %252 }
 0x26e   :  { %v255_v36 = vmul.f32 %v253_v35, %v238_v28 }
 0x270   :  { %v256_v37 = vpack.c.bf16 %v255_v36, %v255_v36  ;;  %v158_v36 = vadd.f32 %v917_v3, %v1136_v13 }
 0x272   :  { %258 = vrot.lane.b32.xlu1 %v256_v37, %s1077_s27 }
 0x2e4   :  { %v259_v38 = vpop.permute.xlu1 %258 }
 0x2e5   :  { %937 = vmatmul.mubr.msk.bf16.vlgmr.msra.gmra.mrb[4].mxu1 %vm188_vm5, %v259_v38 }
 0x2e6   :  { %949 = vmatpush3.bf16.msra.mxu1 %v1109_v4  ;;  %952 = vmatprep.mubr.msk.bf16.mxu1 %vm1074_vm0, %v1073_v0 }
 0x2e7   :  { %950 = vmatprep.subr.bf16.mxu1 %v1073_v0 }
 0x2ea   :  { %951 = vmatpush3.bf16.msra.mxu1 %v1120_v9 }
 0x2eb   :  { %964 = vmatprep.subr.bf16.mxu1 %v1073_v0 }
 0x3b8   :  { %v297_v40 = vpop.f32.mrb[4].mxu1 }
 0x3b9   :  { %v303_v41 = vadd.f32 %v297_v40, %v148_v39  ;;  %v938_v42 = vpop.f32.mrb[5].mxu1 }
 0x3ba   :  { %v300_v43 = vpop.f32.mrb[6].mxu1 }
 0x3bb   :  { %v304_v44 = vmul.f32 0.5, %v303_v41  ;;  %v939_v45 = vpop.f32.mrb[7].mxu1 }
 0x3bd   :  { %v305_v46 = vsel %vm1139_vm4, %v303_v41, %v304_v44 }
 0x3be   :  { %1018 = vtanh.f32 %v305_v46 }
 0x3c8   :  { %v1019_v47 = vpop.eup %1018 }
 0x3c9   :  { %v307_v48 = vmul.f32 0.5, %v1019_v47 }
 0x3cb   :  { %v308_v49 = vadd.f32 0.5, %v307_v48 }
 0x3cd   :  { %v309_v50 = vsel %vm1139_vm4, %v1019_v47, %v308_v49 }
 0x3ce   :  { %312 = vrot.lane.b32.xlu0 %v309_v50, %s1076_s26  ;;  %v310_v53 = vmul.f32 %v309_v50, %v249_v33 }
 0x440   :  { %v313_v51 = vpop.permute.xlu0 %312 }
 0x441   :  { %v315_v52 = vmul.f32 %v313_v51, %v309_v50 }
 0x443   :  { %317 = vrot.lane.b32.xlu1 %v315_v52, %s1077_s27 }
 0x4b5   :  { %v318_v54 = vpop.permute.xlu1 %317 }
 0x4b6   :  { %v320_v55 = vadd.f32 %v318_v54, %v310_v53 }
 0x4b8   :  { %1020 = vtanh.f32 %v320_v55 }
 0x4c2   :  { %v1021_v62 = vpop.eup %1020 }
 0x4c3   :  { %323 = vrot.lane.b32.xlu0 %v1021_v62, %s1076_s26 }
 0x535   :  { %v324_v63 = vpop.permute.xlu0 %323 }
 0x536   :  { %v326_v1 = vmul.f32 %v324_v63, %v309_v50 }
 0x538   :  { %v327_v2 = vpack.c.bf16 %v326_v1, %v326_v1 }
 0x53a   :  { %329 = vrot.lane.b32.xlu1 %v327_v2, %s1077_s27 }
 0x5ac   :  { %v330_v11 = vpop.permute.xlu1 %329 }
 0x5ad   :  { %945 = vmatmul.mubr.msk.bf16.vlgmr.msra.gmra.mrb[8].mxu0 %vm188_vm5, %v330_v11 }
 0x5ae   :  { %957 = vmatpush3.bf16.msra.mxu0 %v1109_v4  ;;  %960 = vmatprep.mubr.msk.bf16.mxu0 %vm1074_vm0, %v1073_v0 }
 0x5af   :  { %958 = vmatprep.subr.bf16.mxu0 %v1073_v0 }
 0x5b2   :  { %959 = vmatpush3.bf16.msra.mxu0 %v1120_v9 }
 0x5b3   :  { %972 = vmatprep.subr.bf16.mxu0 %v1073_v0 }
 0x680   :  { %v368_v14 = vpop.f32.mrb[8].mxu0 }
 0x681   :  { %v374_v15 = vadd.f32 %v368_v14, %v153_v12  ;;  %v946_v16 = vpop.f32.mrb[9].mxu0 }
 0x682   :  { %v371_v17 = vpop.f32.mrb[10].mxu0 }
 0x683   :  { %v375_v18 = vmul.f32 0.5, %v374_v15  ;;  %v947_v19 = vpop.f32.mrb[11].mxu0 }
 0x685   :  { %v376_v21 = vsel %vm1139_vm4, %v374_v15, %v375_v18 }
 0x686   :  { %1022 = vtanh.f32 %v376_v21 }
 0x690   :  { %v1023_v22 = vpop.eup %1022 }
 0x691   :  { %v378_v23 = vmul.f32 0.5, %v1023_v22 }
 0x693   :  { %v379_v24 = vadd.f32 0.5, %v378_v23 }
 0x695   :  { %v380_v25 = vsel %vm1139_vm4, %v1023_v22, %v379_v24  ;;  %v168_v24 = vadd.f32 %v1193_v6, %v1136_v13 }
 0x696   :  { %383 = vrot.lane.b32.xlu0 %v380_v25, %s1076_s26  ;;  %v381_v28 = vmul.f32 %v380_v25, %v320_v55 }
 0x708   :  { %v384_v26 = vpop.permute.xlu0 %383 }
 0x709   :  { %v386_v27 = vmul.f32 %v384_v26, %v380_v25 }
 0x70b   :  { %388 = vrot.lane.b32.xlu1 %v386_v27, %s1077_s27 }
 0x77d   :  { %v389_v29 = vpop.permute.xlu1 %388 }
 0x77e   :  { %v391_v30 = vadd.f32 %v389_v29, %v381_v28 }
 0x780   :  { %1024 = vtanh.f32 %v391_v30 }
 0x78a   :  { %v1025_v31 = vpop.eup %1024 }
 0x78b   :  { %394 = vrot.lane.b32.xlu0 %v1025_v31, %s1076_s26 }
 0x7fd   :  { %v395_v32 = vpop.permute.xlu0 %394 }
 0x7fe   :  { %v397_v33 = vmul.f32 %v395_v32, %v380_v25 }
 0x800   :  { %v398_v34 = vpack.c.bf16 %v397_v33, %v397_v33 }
 0x802   :  { %400 = vrot.lane.b32.xlu1 %v398_v34, %s1077_s27 }
 0x874   :  { %v401_v35 = vpop.permute.xlu1 %400 }
 0x875   :  { %953 = vmatmul.mubr.msk.bf16.vlgmr.msra.gmra.mrb[8].mxu1 %vm188_vm5, %v401_v35 }
 0x876   :  { %965 = vmatpush3.bf16.msra.mxu1 %v1109_v4  ;;  %968 = vmatprep.mubr.msk.bf16.mxu1 %vm1074_vm0, %v1073_v0 }
 0x877   :  { %966 = vmatprep.subr.bf16.mxu1 %v1073_v0 }
 0x87a   :  { %967 = vmatpush3.bf16.msra.mxu1 %v1120_v9 }
 0x87b   :  { %980 = vmatprep.subr.bf16.mxu1 %v1073_v0 }
 0x948   :  { %v439_v37 = vpop.f32.mrb[8].mxu1 }
 0x949   :  { %v445_v38 = vadd.f32 %v439_v37, %v158_v36  ;;  %v954_v39 = vpop.f32.mrb[9].mxu1 }
 0x94a   :  { %v442_v40 = vpop.f32.mrb[10].mxu1 }
 0x94b   :  { %v446_v41 = vmul.f32 0.5, %v445_v38  ;;  %v955_v42 = vpop.f32.mrb[11].mxu1 }
 0x94d   :  { %v447_v43 = vsel %vm1139_vm4, %v445_v38, %v446_v41 }
 0x94e   :  { %1026 = vtanh.f32 %v447_v43  ;;  %v173_v43 = vadd.f32 %v1136_v13, %v1199_v10 }
 0x958   :  { %v1027_v44 = vpop.eup %1026 }
 0x959   :  { %v449_v45 = vmul.f32 0.5, %v1027_v44 }
 0x95b   :  { %v450_v46 = vadd.f32 0.5, %v449_v45 }
 0x95d   :  { %v451_v47 = vsel %vm1139_vm4, %v1027_v44, %v450_v46 }
 0x95e   :  { %454 = vrot.lane.b32.xlu0 %v451_v47, %s1076_s26  ;;  %v452_v50 = vmul.f32 %v451_v47, %v391_v30 }
 0x9d0   :  { %v455_v48 = vpop.permute.xlu0 %454 }
 0x9d1   :  { %v457_v49 = vmul.f32 %v455_v48, %v451_v47 }
 0x9d3   :  { %459 = vrot.lane.b32.xlu1 %v457_v49, %s1077_s27 }
 0xa45   :  { %v460_v51 = vpop.permute.xlu1 %459 }
 0xa46   :  { %v462_v52 = vadd.f32 %v460_v51, %v452_v50 }
 0xa48   :  { %1028 = vtanh.f32 %v462_v52 }
 0xa52   :  { %v1029_v53 = vpop.eup %1028 }
 0xa53   :  { %465 = vrot.lane.b32.xlu0 %v1029_v53, %s1076_s26 }
 0xac5   :  { %v466_v54 = vpop.permute.xlu0 %465 }
 0xac6   :  { %v468_v55 = vmul.f32 %v466_v54, %v451_v47 }
 0xac8   :  { %v469_v56 = vpack.c.bf16 %v468_v55, %v468_v55 }
 0xaca   :  { %471 = vrot.lane.b32.xlu1 %v469_v56, %s1077_s27 }
 0xb3c   :  { %v472_v57 = vpop.permute.xlu1 %471 }
 0xb3d   :  { %961 = vmatmul.mubr.msk.bf16.vlgmr.msra.gmra.mrb[12].mxu0 %vm188_vm5, %v472_v57 }
 0xb3e   :  { %973 = vmatpush3.bf16.msra.mxu0 %v1109_v4  ;;  %976 = vmatprep.mubr.msk.bf16.mxu0 %vm1074_vm0, %v1073_v0 }
 0xb3f   :  { %974 = vmatprep.subr.bf16.mxu0 %v1073_v0 }
 0xb42   :  { %975 = vmatpush3.bf16.msra.mxu0 %v1120_v9 }
 0xc10   :  { %v510_v59 = vpop.f32.mrb[12].mxu0 }
 0xc11   :  { %v516_v60 = vadd.f32 %v510_v59, %v163_v58  ;;  %v962_v61 = vpop.f32.mrb[13].mxu0 }
 0xc12   :  { %v513_v62 = vpop.f32.mrb[14].mxu0 }
 0xc13   :  { %v517_v63 = vmul.f32 0.5, %v516_v60  ;;  %v963_v1 = vpop.f32.mrb[15].mxu0 }
 0xc15   :  { %v518_v2 = vsel %vm1139_vm4, %v516_v60, %v517_v63  ;;  %v178_v63 = vadd.f32 %v1197_v8, %v1136_v13 }
 0xc16   :  { %1030 = vtanh.f32 %v518_v2 }
 0xc20   :  { %v1031_v3 = vpop.eup %1030 }
 0xc21   :  { %v520_v5 = vmul.f32 0.5, %v1031_v3 }
 0xc23   :  { %v521_v11 = vadd.f32 0.5, %v520_v5 }
 0xc25   :  { %v522_v12 = vsel %vm1139_vm4, %v1031_v3, %v521_v11 }
 0xc26   :  { %525 = vrot.lane.b32.xlu0 %v522_v12, %s1076_s26  ;;  %v523_v15 = vmul.f32 %v522_v12, %v462_v52 }
 0xc98   :  { %v526_v14 = vpop.permute.xlu0 %525 }
 0xc99   :  { %v528_v7 = vmul.f32 %v526_v14, %v522_v12 }
 0xc9b   :  { %530 = vrot.lane.b32.xlu1 %v528_v7, %s1077_s27 }
 0xd0d   :  { %v531_v16 = vpop.permute.xlu1 %530 }
 0xd0e   :  { %v533_v17 = vadd.f32 %v531_v16, %v523_v15 }
 0xd10   :  { %1032 = vtanh.f32 %v533_v17 }
 0xd1a   :  { %v1033_v18 = vpop.eup %1032 }
 0xd1b   :  { %536 = vrot.lane.b32.xlu0 %v1033_v18, %s1076_s26 }
 0xd8d   :  { %v537_v19 = vpop.permute.xlu0 %536 }
 0xd8e   :  { %v539_v21 = vmul.f32 %v537_v19, %v522_v12 }
 0xd90   :  { %v540_v22 = vpack.c.bf16 %v539_v21, %v539_v21 }
 0xd92   :  { %542 = vrot.lane.b32.xlu1 %v540_v22, %s1077_s27  ;;  %v32_v22 = vld [vmem:[#allocation2 + $0x30] sm:$0xff] }
 0xe04   :  { %v543_v23 = vpop.permute.xlu1 %542 }
 0xe05   :  { %969 = vmatmul.mubr.msk.bf16.vlgmr.msra.gmra.mrb[12].mxu1 %vm188_vm5, %v543_v23  ;;  %v33_v23 = vld [vmem:[#allocation2 + $0x38] sm:$0xff] }
 0xe06   :  { %981 = vmatpush3.bf16.msra.mxu1 %v1109_v4  ;;  %984 = vmatprep.mubr.msk.bf16.mxu1 %vm1074_vm0, %v1073_v0 }
 0xe07   :  { %982 = vmatprep.subr.bf16.mxu1 %v1073_v0 }
 0xe0a   :  { %983 = vmatpush3.bf16.msra.mxu1 %v1120_v9 }
 0xed8   :  { %v581_v25 = vpop.f32.mrb[12].mxu1 }
 0xed9   :  { %v587_v26 = vadd.f32 %v581_v25, %v168_v24  ;;  %v970_v27 = vpop.f32.mrb[13].mxu1  ;;  %v34_v24 = vld [vmem:[#allocation2 + $0x40] sm:$0xff]  ;;  %v1078_v25 = vmov 0.0|0.0  }
 0xeda   :  { %v584_v28 = vpop.f32.mrb[14].mxu1  ;;  %999 = vmatprep.subr.bf16.mxu0 %v1078_v25  ;;  %v35_v27 = vld [vmem:[#allocation2 + $0x48] sm:$0xff] }
 0xedb   :  { %v588_v29 = vmul.f32 0.5, %v587_v26  ;;  %v971_v30 = vpop.f32.mrb[15].mxu1  ;;  %v1003_v20 = vpack.c.bf16 %v35_v27, %v34_v24 }
 0xedd   :  { %v589_v31 = vsel %vm1139_vm4, %v587_v26, %v588_v29  ;;  %v1000_v26 = vpack.c.bf16 %v33_v23, %v32_v22 }
 0xede   :  { %1034 = vtanh.f32 %v589_v31 }
 0xee8   :  { %v1035_v4 = vpop.eup %1034 }
 0xee9   :  { %v591_v32 = vmul.f32 0.5, %v1035_v4 }
 0xeeb   :  { %v592_v33 = vadd.f32 0.5, %v591_v32 }
 0xeed   :  { %v593_v34 = vsel %vm1139_vm4, %v1035_v4, %v592_v33  ;;  %v868_v4 = vld [vmem:[#allocation2 + $0x50] ss:$0 sm:$0xff] }
 0xeee   :  { %596 = vrot.lane.b32.xlu0 %v593_v34, %s1076_s26  ;;  %v594_v35 = vmul.f32 %v593_v34, %v533_v17 }
 0xf60   :  { %v597_v9 = vpop.permute.xlu0 %596 }
 0xf61   :  { %v599_v6 = vmul.f32 %v597_v9, %v593_v34  ;;  %v870_v9 = vld [vmem:[#allocation2 + $0x51] ss:$0 sm:$0xff] }
 0xf63   :  { %601 = vrot.lane.b32.xlu1 %v599_v6, %s1077_s27 }
 0xfd5   :  { %v602_v36 = vpop.permute.xlu1 %601 }
 0xfd6   :  { %v604_v37 = vadd.f32 %v602_v36, %v594_v35  ;;  %v871_v36 = vld [vmem:[#allocation2 + $0x52] ss:$0 sm:$0xff] }
 0xfd8   :  { %1036 = vtanh.f32 %v604_v37 }
 0xfe2   :  { %v1037_v38 = vpop.eup %1036 }
 0xfe3   :  { %607 = vrot.lane.b32.xlu0 %v1037_v38, %s1076_s26 }
0x1055   :  { %v608_v39 = vpop.permute.xlu0 %607 }
0x1056   :  { %v610_v40 = vmul.f32 %v608_v39, %v593_v34 }
0x1058   :  { %v611_v41 = vpack.c.bf16 %v610_v40, %v610_v40 }
0x105a   :  { %613 = vrot.lane.b32.xlu1 %v611_v41, %s1077_s27 }
0x10cc   :  { %v614_v42 = vpop.permute.xlu1 %613 }
0x10cd   :  { %977 = vmatmul.mubr.msk.bf16.vlgmr.msra.gmra.mrb[16].mxu0 %vm188_vm5, %v614_v42 }
0x10ce   :  { %996 = vmatprep.mubr.msk.f32.mxu0 %vm1074_vm0, %v1073_v0  ;;  %1001 = vmatpush3.bf16.msra.mxu0 %v1000_v26 }
0x10cf   :  { %1002 = vmatprep.subr.bf16.mxu0 %v1078_v25 }
0x10d2   :  { %1004 = vmatpush3.bf16.msra.mxu0 %v1003_v20 }
0x11a0   :  { %v652_v44 = vpop.f32.mrb[16].mxu0 }
0x11a1   :  { %v658_v45 = vadd.f32 %v652_v44, %v173_v43  ;;  %v978_v46 = vpop.f32.mrb[17].mxu0 }
0x11a2   :  { %v655_v47 = vpop.f32.mrb[18].mxu0 }
0x11a3   :  { %v659_v48 = vmul.f32 0.5, %v658_v45  ;;  %v979_v49 = vpop.f32.mrb[19].mxu0 }
0x11a5   :  { %v660_v50 = vsel %vm1139_vm4, %v658_v45, %v659_v48 }
0x11a6   :  { %1038 = vtanh.f32 %v660_v50 }
0x11b0   :  { %v1039_v51 = vpop.eup %1038 }
0x11b1   :  { %v662_v52 = vmul.f32 0.5, %v1039_v51 }
0x11b3   :  { %v663_v53 = vadd.f32 0.5, %v662_v52 }
0x11b5   :  { %v664_v54 = vsel %vm1139_vm4, %v1039_v51, %v663_v53 }
0x11b6   :  { %667 = vrot.lane.b32.xlu0 %v664_v54, %s1076_s26  ;;  %v665_v55 = vmul.f32 %v664_v54, %v604_v37 }
0x1228   :  { %v668_v0 = vpop.permute.xlu0 %667 }
0x1229   :  { %v670_v10 = vmul.f32 %v668_v0, %v664_v54 }
0x122b   :  { %672 = vrot.lane.b32.xlu1 %v670_v10, %s1077_s27 }
0x129d   :  { %v673_v56 = vpop.permute.xlu1 %672 }
0x129e   :  { %v675_v57 = vadd.f32 %v673_v56, %v665_v55 }
0x12a0   :  { %1040 = vtanh.f32 %v675_v57 }
0x12aa   :  { %v1041_v58 = vpop.eup %1040 }
0x12ab   :  { %678 = vrot.lane.b32.xlu0 %v1041_v58, %s1076_s26 }
0x131d   :  { %v679_v59 = vpop.permute.xlu0 %678 }
0x131e   :  { %v681_v60 = vmul.f32 %v679_v59, %v664_v54 }
0x1320   :  { %v682_v61 = vpack.c.bf16 %v681_v60, %v681_v60 }
0x1322   :  { %684 = vrot.lane.b32.xlu1 %v682_v61, %s1077_s27 }
0x1394   :  { %v685_v62 = vpop.permute.xlu1 %684 }
0x1395   :  { %985 = vmatmul.mubr.msk.bf16.vlgmr.msra.gmra.mrb[16].mxu1 %vm188_vm5, %v685_v62 }
0x1468   :  { %v723_v1 = vpop.f32.mrb[16].mxu1 }
0x1469   :  { %v729_v2 = vadd.f32 %v723_v1, %v178_v63  ;;  %v986_v3 = vpop.f32.mrb[17].mxu1 }
0x146a   :  { %v726_v5 = vpop.f32.mrb[18].mxu1 }
0x146b   :  { %v730_v11 = vmul.f32 0.5, %v729_v2  ;;  %v987_v12 = vpop.f32.mrb[19].mxu1 }
0x146d   :  { %v731_v14 = vsel %vm1139_vm4, %v729_v2, %v730_v11 }
0x146e   :  { %1042 = vtanh.f32 %v731_v14 }
0x1478   :  { %v1043_v7 = vpop.eup %1042 }
0x1479   :  { %v733_v15 = vmul.f32 0.5, %v1043_v7 }
0x147b   :  { %v734_v16 = vadd.f32 0.5, %v733_v15 }
0x147d   :  { %v735_v17 = vsel %vm1139_vm4, %v1043_v7, %v734_v16 }
0x147e   :  { %738 = vrot.lane.b32.xlu0 %v735_v17, %s1076_s26  ;;  %v736_v8 = vmul.f32 %v735_v17, %v675_v57 }
0x14f0   :  { %v739_v18 = vpop.permute.xlu0 %738 }
0x14f1   :  { %v741_v13 = vmul.f32 %v739_v18, %v735_v17 }
0x14f3   :  { %743 = vrot.lane.b32.xlu1 %v741_v13, %s1077_s27 }
0x1565   :  { %v744_v19 = vpop.permute.xlu1 %743 }
0x1566   :  { %v746_v21 = vadd.f32 %v744_v19, %v736_v8 }
0x1568   :  { %1044 = vtanh.f32 %v746_v21 }
0x1572   :  { %v1045_v28 = vpop.eup %1044 }
0x1573   :  { %749 = vrot.lane.b32.xlu0 %v1045_v28, %s1076_s26 }
0x15e5   :  { %v750_v29 = vpop.permute.xlu0 %749 }
0x15e6   :  { %v752_v30 = vmul.f32 %v750_v29, %v735_v17 }
0x15e8   :  { %758 = vrot.lane.b32.xlu1 %v752_v30, %s1077_s27 }
0x165a   :  { %v759_v31 = vpop.permute.xlu1 %758 }
0x165b   :  { %997 = vmatmul.mubr.msk.f32.vlgmr.msra.gmra.mrb[20].mxu0 %vm188_vm5, %v759_v31 }
0x172e   :  { %v828_v32 = vpop.f32.mrb[20].mxu0 }
0x172f   :  { %v829_v33 = vadd.f32 %v868_v4, %v828_v32  ;;  %v998_v34 = vpop.f32.mrb[21].mxu0 }
0x1731   :  { %v832_v6 = vmax.f32 %v829_v33, 0.0 }
0x1733   :  { %v837_v35 = vmul.f32 %v870_v9, %v832_v6 }
0x1735   :  { %838 = vadd.xlane.f32.xlu0 %v837_v35 }
0x17c2   :  { %v839_v37 = vpop.xlane.xlu0 %838 }
0x17c3   :  { %v844_v38 = vadd.f32 %v871_v36, %v839_v37 }
0x17c5   :  { %846 = vst.msk [vmem:[%s1295_s2] sm:$0xff] %vm845_vm6, %v844_v38 }
0x17c6   :  { %851 = vsyncpa [#allocation3], 1 }

</bundles_post_ra>
